<compile_context>
chip_gen: v7x
topology: tpu7x:2x2x1
jax: 0.10.0
libtpu: 0.0.40
codegen_flags: <defaults>
</compile_context>

<pallas_src>
import functools

import jax
import jax.numpy as jnp
from jax.experimental import pallas as pl
from jax.experimental.pallas import tpu as pltpu

_NEG_BIG = -1e30  # mask value for padded (non-existent) classes


def _round_up(n, m):
    return ((n + m - 1) // m) * m


# ---------------------------------------------------------------------------
# Kernels: one batch-tile per grid step; all weights resident (index_map -> 0).
# ---------------------------------------------------------------------------
def _softmax_store(logits, out_ref):
    # F.softmax(logits, dim=1); padded classes carry -1e30 -> exp underflows to 0
    m = jnp.max(logits, axis=1, keepdims=True)
    e = jnp.exp(logits - m)
    denom = jnp.sum(e, axis=1, keepdims=True)
    inv = pl.reciprocal(denom, approx=True)       # EUP fast path
    inv = inv * (2.0 - denom * inv)               # one Newton step -> ~f32 accurate
    out_ref[...] = e * inv


def _fwd_kernel_ce(x_ref, w1_ref, b1_ref, head_ref, hbias_ref, out_ref):
    # 'ce' mode: W2/b2/Wout/bout were folded into (head, hbias) at prep time.
    x = x_ref[...]                                                    # [tb, D_in]
    h = jnp.dot(x, w1_ref[...], preferred_element_type=jnp.float32) + b1_ref[...]
    h = jnp.maximum(h, 0.0)
    logits = jnp.dot(h.astype(head_ref.dtype), head_ref[...],
                     preferred_element_type=jnp.float32) + hbias_ref[...]
    _softmax_store(logits, out_ref)


def _fwd_kernel_norm(x_ref, w1_ref, b1_ref, w2_ref, b2_ref, head_ref, hbias_ref,
                     out_ref, *, fused, ncls_pad):
    # 'sim' / 'fus' modes: need the embedding norm, so emb is materialized.
    x = x_ref[...]                                                    # [tb, D_in]
    h = jnp.dot(x, w1_ref[...], preferred_element_type=jnp.float32) + b1_ref[...]
    h = jnp.maximum(h, 0.0)
    emb = jnp.dot(h.astype(w2_ref.dtype), w2_ref[...],
                  preferred_element_type=jnp.float32) + b2_ref[...]   # [tb, E_pad] f32

    # Single head matmul: [E_pad, P] (sim) or [E_pad, 2P] (fus, fused heads).
    head = jnp.dot(emb.astype(head_ref.dtype), head_ref[...],
                   preferred_element_type=jnp.float32)
    hbias = hbias_ref[...]                                            # [1, P] f32

    # cosine sim = (emb @ (scale * proto/||proto||)) * rsqrt(||emb||^2)
    inv_norm = jax.lax.rsqrt(
        jnp.sum(emb * emb, axis=-1, keepdims=True) + 1e-12)           # [tb, 1]

    if fused:
        # 0.5 already folded into both halves and into hbias at prep time.
        logits = head[:, :ncls_pad] * inv_norm + head[:, ncls_pad:] + hbias
    else:
        logits = head * inv_norm + hbias

    _softmax_store(logits, out_ref)


# ---------------------------------------------------------------------------
# Parameter preparation (done once, outside the hot path).
# ---------------------------------------------------------------------------
def prepare_params(params, inf_mode="sim", scale=10.0, compute_dtype=jnp.bfloat16):
    w1, b1, w2, b2, proto, wout, bout = [jnp.asarray(p, jnp.float32) for p in params]
    d_in, hid = w1.shape
    emb = w2.shape[1]
    ncls = proto.shape[1]
    hid_pad = _round_up(hid, 128)
    emb_pad = _round_up(emb, 128)
    ncls_pad = _round_up(ncls, 128)

    def pad_to(a, rows, cols):
        return jnp.pad(a, ((0, rows - a.shape[0]), (0, cols - a.shape[1])))

    # Lane-pad hidden / embedding dims with zeros (exactness preserved: padded
    # hidden lanes are ReLU(0)=0, padded emb lanes are 0 -> ||emb||^2 unchanged).
    w1p = pad_to(w1, d_in, hid_pad)
    b1p = pad_to(b1, 1, hid_pad)
    w2p = pad_to(w2, hid_pad, emb_pad)
    b2p = pad_to(b2, 1, emb_pad)
    boutp = pad_to(bout, 1, ncls_pad)

    # class mask: 0 for real classes, -1e30 for padded ones (folded into hbias)
    mask_bias = jnp.concatenate(
        [jnp.zeros((1, ncls), jnp.float32),
         jnp.full((1, ncls_pad - ncls), _NEG_BIG, jnp.float32)], axis=1)

    # Hoisted constant work: normalize prototypes and fold in `scale`.
    proto_n = proto * jax.lax.rsqrt(
        jnp.sum(proto * proto, axis=0, keepdims=True) + 1e-12)
    proto_sn = scale * proto_n                                        # [E, NCLS]

    cd = compute_dtype
    prepared = {
        "inf_mode": inf_mode, "ncls": ncls, "ncls_pad": ncls_pad,
        "w1": w1p.astype(cd), "b1": b1p,          # biases stay f32 (post-acc adds)
    }

    if inf_mode == "sim":
        head = pad_to(proto_sn, emb_pad, ncls_pad)
        hbias = mask_bias
        prepared.update(w2=w2p.astype(cd), b2=b2p,
                        head=head.astype(cd), hbias=hbias)
    elif inf_mode == "ce":
        # Fold the whole linear tail into the head:
        #   (h@W2 + b2)@Wout + bout == h@(W2@Wout) + (b2@Wout + bout)
        woutp = pad_to(wout, emb, ncls_pad)
        head = pad_to(w2 @ woutp, hid_pad, ncls_pad)
        hbias = b2 @ woutp + boutp + mask_bias
        prepared.update(head=head.astype(cd), hbias=hbias)
    elif inf_mode == "fus":
        # Fold the 0.5 averaging into both halves and the bias.
        sim_half = pad_to(0.5 * proto_sn, emb_pad, ncls_pad)
        ce_half = pad_to(0.5 * wout, emb_pad, ncls_pad)
        head = jnp.concatenate([sim_half, ce_half], axis=1)           # [E_pad, 2P]
        hbias = 0.5 * boutp + mask_bias
        prepared.update(w2=w2p.astype(cd), b2=b2p,
                        head=head.astype(cd), hbias=hbias)
    else:
        raise ValueError(f"unknown inf_mode: {inf_mode!r}")
    return prepared


# ---------------------------------------------------------------------------
# Wrapper: flatten (glue), batched grid over B, resident weights.
# ---------------------------------------------------------------------------
def wrapper_forward(x_nchw, prepared, *, tile_b=2048, vmem_budget_bytes=48 << 20):
    mode = prepared["inf_mode"]
    ncls, ncls_pad = prepared["ncls"], prepared["ncls_pad"]
    w1, b1 = prepared["w1"], prepared["b1"]
    head, hbias = prepared["head"], prepared["hbias"]

    B = x_nchw.shape[0]
    x_flat = x_nchw.reshape(B, -1).astype(w1.dtype)   # bf16 stream (same as .view)
    d_in = x_flat.shape[1]
    hid_pad = w1.shape[1]
    head_w = head.shape[1]
    xb = jnp.dtype(w1.dtype).itemsize

    if mode == "ce":
        weights = (w1, b1, head, hbias)
        resident_bytes = (w1.size + head.size) * xb + (b1.size + hbias.size) * 4
    else:
        w2, b2 = prepared["w2"], prepared["b2"]
        emb_pad = w2.shape[1]
        weights = (w1, b1, w2, b2, head, hbias)
        resident_bytes = ((w1.size + w2.size + head.size) * xb
                          + (b1.size + b2.size + hbias.size) * 4)

    # Tile selection: for B > 16 guarantee >= 2 grid steps (v7x megacore) and
    # keep double-buffered x/out tiles + resident weights within the VMEM budget.
    def vmem_need(t):
        return resident_bytes + 2 * t * d_in * xb + 2 * t * ncls_pad * 4

    if B <= 16:
        tb = B
    else:
        tb = min(tile_b, _round_up(pl.cdiv(B, 2), 8))
        tb = max(8, (tb // 8) * 8)
        while tb > 8 and vmem_need(tb) > vmem_budget_bytes:
            tb = max(8, ((tb // 2) // 8) * 8)

    grid = (pl.cdiv(B, tb),)
    resident = lambda i: (0, 0)

    if mode == "ce":
        kernel = _fwd_kernel_ce
        w_specs = [
            pl.BlockSpec((d_in, hid_pad), resident),      # W1 (padded cols)
            pl.BlockSpec((1, hid_pad), resident),         # b1
            pl.BlockSpec((hid_pad, head_w), resident),    # folded head (W2@Wout)
            pl.BlockSpec((1, ncls_pad), resident),        # folded bias + mask
        ]
    else:
        kernel = functools.partial(_fwd_kernel_norm,
                                   fused=(mode == "fus"), ncls_pad=ncls_pad)
        w_specs = [
            pl.BlockSpec((d_in, hid_pad), resident),      # W1
            pl.BlockSpec((1, hid_pad), resident),         # b1
            pl.BlockSpec((hid_pad, emb_pad), resident),   # W2
            pl.BlockSpec((1, emb_pad), resident),         # b2
            pl.BlockSpec((emb_pad, head_w), resident),    # head ([E,P] or [E,2P])
            pl.BlockSpec((1, ncls_pad), resident),        # head bias + mask
        ]

    cp_kwargs = dict(dimension_semantics=("parallel",))
    need = vmem_need(tb)
    if need > (16 << 20):  # only raise scoped VMEM past the v5e default when needed
        cp_kwargs["vmem_limit_bytes"] = int(min(need + (4 << 20), vmem_budget_bytes))

    out_padded = pl.pallas_call(
        kernel,
        out_shape=jax.ShapeDtypeStruct((B, ncls_pad), jnp.float32),
        grid=grid,
        in_specs=[pl.BlockSpec((tb, d_in), lambda i: (i, 0))] + w_specs,  # x tile pipelined
        out_specs=pl.BlockSpec((tb, ncls_pad), lambda i: (i, 0)),
        compiler_params=pltpu.CompilerParams(**cp_kwargs),
    )(x_flat, *weights)

    return out_padded[:, :ncls]                           # drop lane padding (glue)


# ---------------------------------------------------------------------------
# Pure-JAX reference (mirrors the PyTorch module) + parameter init.
# ---------------------------------------------------------------------------
def _reference_forward(x_nchw, params, inf_mode, scale=10.0):
    w1, b1, w2, b2, proto, wout, bout = params
    B = x_nchw.shape[0]
    x = x_nchw.reshape(B, -1).astype(jnp.float32)
    h = jnp.maximum(x @ w1 + b1, 0.0)
    e = h @ w2 + b2
    eps = 1e-12
    e_n = e * jax.lax.rsqrt(jnp.sum(e * e, axis=-1, keepdims=True) + eps)
    p_n = proto * jax.lax.rsqrt(jnp.sum(proto * proto, axis=0, keepdims=True) + eps)
    sim = scale * (e_n @ p_n)
    ce = e @ wout + bout
    logits = {"sim": sim, "ce": ce, "fus": 0.5 * (sim + ce)}[inf_mode]
    return jax.nn.softmax(logits, axis=1)


def init_params(key, d_in, hidden, embed, ncls):
    ks = jax.random.split(key, 7)
    w1 = jax.random.normal(ks[0], (d_in, hidden), jnp.float32) * 0.05
    b1 = jax.random.normal(ks[1], (1, hidden), jnp.float32) * 0.01
    w2 = jax.random.normal(ks[2], (hidden, embed), jnp.float32) * 0.05
    b2 = jax.random.normal(ks[3], (1, embed), jnp.float32) * 0.01
    proto = jax.random.normal(ks[4], (embed, ncls), jnp.float32)     # class prototypes
    wout = jax.random.normal(ks[5], (embed, ncls), jnp.float32) * 0.05
    bout = jax.random.normal(ks[6], (1, ncls), jnp.float32) * 0.01
    return (w1, b1, w2, b2, proto, wout, bout)


if __name__ == "__main__":
    # Small MNIST-like shapes: batch=2, channels=1, spatial=16x16.
    # (Note: B=2 is a correctness-only configuration — a single grid step is
    #  launch/DMA-overhead dominated; the kernel is tuned for large batches.)
    B, C, H, W = 2, 1, 16, 16
    D_IN, HID, EMB, NCLS = C * H * W, 64, 32, 10
    SCALE = 10.0

    key = jax.random.PRNGKey(0)
    kx, kp = jax.random.split(key)
    x = jax.random.normal(kx, (B, C, H, W), jnp.float32)
    params = init_params(kp, D_IN, HID, EMB, NCLS)

    for mode in ("sim", "ce", "fus"):
        ref = _reference_forward(x, params, mode, SCALE)

        # Exact path: f32 compute/stream, tight tolerance.
        prep32 = prepare_params(params, inf_mode=mode, scale=SCALE,
                                compute_dtype=jnp.float32)
        probs32 = jax.block_until_ready(wrapper_forward(x, prep32))
        assert probs32.shape == (B, NCLS), mode
        assert bool(jnp.all(jnp.abs(jnp.sum(probs32, axis=1) - 1.0) < 1e-5)), mode
        assert bool(jnp.all(jnp.abs(probs32 - ref) < 1e-4)), mode

        # Default perf path: bf16 streaming / f32 accumulation, looser tolerance.
        prep16 = prepare_params(params, inf_mode=mode, scale=SCALE)
        probs16 = jax.block_until_ready(wrapper_forward(x, prep16))
        assert probs16.shape == (B, NCLS), mode
        assert bool(jnp.all(jnp.abs(jnp.sum(probs16, axis=1) - 1.0) < 1e-3)), mode
        assert bool(jnp.all(jnp.abs(probs16 - ref) < 6e-2)), mode

    # Exercise the multi-step batch grid (>= 2 steps -> v7x megacore path).
    B2 = 64
    x2 = jax.random.normal(jax.random.PRNGKey(1), (B2, C, H, W), jnp.float32)
    prep = prepare_params(params, inf_mode="fus", scale=SCALE,
                          compute_dtype=jnp.float32)
    probs2 = jax.block_until_ready(wrapper_forward(x2, prep, tile_b=32))
    ref2 = _reference_forward(x2, params, "fus", SCALE)
    assert probs2.shape == (B2, NCLS)
    assert bool(jnp.all(jnp.abs(probs2 - ref2) < 1e-4))

    print("KERNEL_OK")
</pallas_src>

<mosaic_0001>
module attributes {stable_mosaic.version = 11 : i64} {
  func.func @_fwd_kernel_norm(%arg0: i32, %arg1: memref<2x256xf32, #tpu.memory_space<vmem>>, %arg2: memref<256x128xf32, #tpu.memory_space<vmem>>, %arg3: memref<1x128xf32, #tpu.memory_space<vmem>>, %arg4: memref<128x128xf32, #tpu.memory_space<vmem>>, %arg5: memref<1x128xf32, #tpu.memory_space<vmem>>, %arg6: memref<128x128xf32, #tpu.memory_space<vmem>>, %arg7: memref<1x128xf32, #tpu.memory_space<vmem>>, %arg8: memref<2x128xf32, #tpu.memory_space<vmem>>) attributes {dimension_semantics = [#tpu.dimension_semantics<parallel>], iteration_bounds = array<i64: 1>, scalar_prefetch = 0 : i64, scratch_operands = 0 : i64, tpu.core_type = #tpu.core_type<tc>, window_params = [{transform_indices = @transform_0, window_bounds = array<i64: 2, 256>}, {pipeline_mode = #tpu.pipeline_mode<synchronous>, transform_indices = @transform_1, window_bounds = array<i64: 256, 128>}, {pipeline_mode = #tpu.pipeline_mode<synchronous>, transform_indices = @transform_2, window_bounds = array<i64: 1, 128>}, {pipeline_mode = #tpu.pipeline_mode<synchronous>, transform_indices = @transform_3, window_bounds = array<i64: 128, 128>}, {pipeline_mode = #tpu.pipeline_mode<synchronous>, transform_indices = @transform_4, window_bounds = array<i64: 1, 128>}, {pipeline_mode = #tpu.pipeline_mode<synchronous>, transform_indices = @transform_5, window_bounds = array<i64: 128, 128>}, {pipeline_mode = #tpu.pipeline_mode<synchronous>, transform_indices = @transform_6, window_bounds = array<i64: 1, 128>}, {transform_indices = @transform_7, window_bounds = array<i64: 2, 128>}]} {
    %c0 = arith.constant 0 : index
    %c0_0 = arith.constant 0 : index
    %0 = vector.load %arg1[%c0, %c0_0] : memref<2x256xf32, #tpu.memory_space<vmem>>, vector<2x256xf32>
    %c0_1 = arith.constant 0 : index
    %c0_2 = arith.constant 0 : index
    %1 = vector.load %arg2[%c0_1, %c0_2] : memref<256x128xf32, #tpu.memory_space<vmem>>, vector<256x128xf32>
    %cst = arith.constant dense<0.000000e+00> : vector<2x128xf32>
    %2 = tpu.matmul %0, %1, %cst {dimension_numbers = #tpu.dot_dimension_numbers<[1], [0], [0], [1], [0, 0, 1, 1], [], []>} : vector<2x256xf32>, vector<256x128xf32>, vector<2x128xf32> -> vector<2x128xf32>
    %c0_3 = arith.constant 0 : index
    %c0_4 = arith.constant 0 : index
    %3 = vector.load %arg3[%c0_3, %c0_4] : memref<1x128xf32, #tpu.memory_space<vmem>>, vector<1x128xf32>
    %4 = vector.broadcast %3 : vector<1x128xf32> to vector<2x128xf32>
    %5 = arith.addf %2, %4 : vector<2x128xf32>
    %cst_5 = arith.constant 0.000000e+00 : f32
    %6 = vector.broadcast %cst_5 : f32 to vector<2x128xf32>
    %7 = arith.maximumf %5, %6 : vector<2x128xf32>
    %c0_6 = arith.constant 0 : index
    %c0_7 = arith.constant 0 : index
    %8 = vector.load %arg4[%c0_6, %c0_7] : memref<128x128xf32, #tpu.memory_space<vmem>>, vector<128x128xf32>
    %cst_8 = arith.constant dense<0.000000e+00> : vector<2x128xf32>
    %9 = tpu.matmul %7, %8, %cst_8 {dimension_numbers = #tpu.dot_dimension_numbers<[1], [0], [0], [1], [0, 0, 1, 1], [], []>} : vector<2x128xf32>, vector<128x128xf32>, vector<2x128xf32> -> vector<2x128xf32>
    %c0_9 = arith.constant 0 : index
    %c0_10 = arith.constant 0 : index
    %10 = vector.load %arg5[%c0_9, %c0_10] : memref<1x128xf32, #tpu.memory_space<vmem>>, vector<1x128xf32>
    %11 = vector.broadcast %10 : vector<1x128xf32> to vector<2x128xf32>
    %12 = arith.addf %9, %11 : vector<2x128xf32>
    %c0_11 = arith.constant 0 : index
    %c0_12 = arith.constant 0 : index
    %13 = vector.load %arg6[%c0_11, %c0_12] : memref<128x128xf32, #tpu.memory_space<vmem>>, vector<128x128xf32>
    %cst_13 = arith.constant dense<0.000000e+00> : vector<2x128xf32>
    %14 = tpu.matmul %12, %13, %cst_13 {dimension_numbers = #tpu.dot_dimension_numbers<[1], [0], [0], [1], [0, 0, 1, 1], [], []>} : vector<2x128xf32>, vector<128x128xf32>, vector<2x128xf32> -> vector<2x128xf32>
    %c0_14 = arith.constant 0 : index
    %c0_15 = arith.constant 0 : index
    %15 = vector.load %arg7[%c0_14, %c0_15] : memref<1x128xf32, #tpu.memory_space<vmem>>, vector<1x128xf32>
    %16 = arith.mulf %12, %12 : vector<2x128xf32>
    %cst_16 = arith.constant dense<0.000000e+00> : vector<2xf32>
    %17 = vector.multi_reduction <add>, %16, %cst_16 [1] : vector<2x128xf32> to vector<2xf32>
    %18 = vector.shape_cast %17 : vector<2xf32> to vector<2x1xf32>
    %cst_17 = arith.constant 9.99999996E-13 : f32
    %19 = vector.broadcast %cst_17 : f32 to vector<2x1xf32>
    %20 = arith.addf %18, %19 : vector<2x1xf32>
    %21 = math.rsqrt %20 : vector<2x1xf32>
    %22 = vector.broadcast %21 : vector<2x1xf32> to vector<2x128xf32>
    %23 = arith.mulf %14, %22 : vector<2x128xf32>
    %24 = vector.broadcast %15 : vector<1x128xf32> to vector<2x128xf32>
    %25 = arith.addf %23, %24 : vector<2x128xf32>
    %cst_18 = arith.constant dense<0xFF800000> : vector<2xf32>
    %26 = vector.multi_reduction <maximumf>, %25, %cst_18 [1] : vector<2x128xf32> to vector<2xf32>
    %27 = vector.shape_cast %26 : vector<2xf32> to vector<2x1xf32>
    %28 = vector.broadcast %27 : vector<2x1xf32> to vector<2x128xf32>
    %29 = arith.subf %25, %28 : vector<2x128xf32>
    %30 = math.exp %29 : vector<2x128xf32>
    %cst_19 = arith.constant dense<0.000000e+00> : vector<2xf32>
    %31 = vector.multi_reduction <add>, %30, %cst_19 [1] : vector<2x128xf32> to vector<2xf32>
    %32 = vector.shape_cast %31 : vector<2xf32> to vector<2x1xf32>
    %33 = tpu.reciprocal %32 {approx = true} : vector<2x1xf32> -> vector<2x1xf32>
    %34 = arith.mulf %32, %33 : vector<2x1xf32>
    %cst_20 = arith.constant 2.000000e+00 : f32
    %35 = vector.broadcast %cst_20 : f32 to vector<2x1xf32>
    %36 = arith.subf %35, %34 : vector<2x1xf32>
    %37 = arith.mulf %33, %36 : vector<2x1xf32>
    %38 = vector.broadcast %37 : vector<2x1xf32> to vector<2x128xf32>
    %39 = arith.mulf %30, %38 : vector<2x128xf32>
    %c0_21 = arith.constant 0 : index
    %c0_22 = arith.constant 0 : index
    %40 = vector.load %arg8[%c0_21, %c0_22] : memref<2x128xf32, #tpu.memory_space<vmem>>, vector<2x128xf32>
    tpu.vector_store %arg8[%c0_21, %c0_22], %39 {strides = array<i32>} : memref<2x128xf32, #tpu.memory_space<vmem>>, vector<2x128xf32>,
    return
  }
  func.func @transform_0(%arg0: i32) -> (i32, i32) {
    %c0_i32 = arith.constant 0 : i32
    %c0_i32_0 = arith.constant 0 : i32
    return %arg0, %c0_i32 : i32, i32
  }
  func.func @transform_1(%arg0: i32) -> (i32, i32) {
    %c0_i32 = arith.constant 0 : i32
    %c0_i32_0 = arith.constant 0 : i32
    %c0_i32_1 = arith.constant 0 : i32
    return %c0_i32, %c0_i32_0 : i32, i32
  }
  func.func @transform_2(%arg0: i32) -> (i32, i32) {
    %c0_i32 = arith.constant 0 : i32
    %c0_i32_0 = arith.constant 0 : i32
    %c0_i32_1 = arith.constant 0 : i32
    return %c0_i32, %c0_i32_0 : i32, i32
  }
  func.func @transform_3(%arg0: i32) -> (i32, i32) {
    %c0_i32 = arith.constant 0 : i32
    %c0_i32_0 = arith.constant 0 : i32
    %c0_i32_1 = arith.constant 0 : i32
    return %c0_i32, %c0_i32_0 : i32, i32
  }
  func.func @transform_4(%arg0: i32) -> (i32, i32) {
    %c0_i32 = arith.constant 0 : i32
    %c0_i32_0 = arith.constant 0 : i32
    %c0_i32_1 = arith.constant 0 : i32
    return %c0_i32, %c0_i32_0 : i32, i32
  }
  func.func @transform_5(%arg0: i32) -> (i32, i32) {
    %c0_i32 = arith.constant 0 : i32
    %c0_i32_0 = arith.constant 0 : i32
    %c0_i32_1 = arith.constant 0 : i32
    return %c0_i32, %c0_i32_0 : i32, i32
  }
  func.func @transform_6(%arg0: i32) -> (i32, i32) {
    %c0_i32 = arith.constant 0 : i32
    %c0_i32_0 = arith.constant 0 : i32
    %c0_i32_1 = arith.constant 0 : i32
    return %c0_i32, %c0_i32_0 : i32, i32
  }
  func.func @transform_7(%arg0: i32) -> (i32, i32) {
    %c0_i32 = arith.constant 0 : i32
    %c0_i32_0 = arith.constant 0 : i32
    return %arg0, %c0_i32 : i32, i32
  }
}

</mosaic_0001>

<bundles_post_ra>
// kernel: tpu_custom_call.1
= control target key start
LH: loop header
LB: loop body
LE: loop exit
PB: predicated region body
PF: predicated region fallthrough
CT: control target
= control target key end

     0   :  { %12 = vsyncpa [#allocation3], 0  ;;  %s938_s0 = inlined_call_operand.hbm [shape: f32[2,256], index: 0, kind: input, shape index: {}]   ;;  %s939_s1 = inlined_call_operand.hbm [shape: f32[256,128], index: 1, kind: input, shape index: {}]   ;;  %s940_s2 = inlined_call_operand.vmem [shape: f32[1,128], index: 2, kind: input, shape index: {}]   ;;  %s941_s3 = inlined_call_operand.hbm [shape: f32[128,128], index: 3, kind: input, shape index: {}]   ;;  %s942_s4 = inlined_call_operand.vmem [shape: f32[1,128], index: 4, kind: input, shape index: {}]   ;;  %s943_s5 = inlined_call_operand.hbm [shape: f32[128,128], index: 5, kind: input, shape index: {}]   ;;  %s944_s6 = inlined_call_operand.vmem [shape: f32[1,128], index: 6, kind: input, shape index: {}]   ;;  %s945_s7 = inlined_call_operand.hbm [shape: f32[2,128], index: 7, kind: output, shape index: {}]  }
   0x1   :  { %13 = vsyncpa [#allocation6], 0 }
   0x2   :  { %14 = vsyncpa [#allocation9], 0 }
   0x3   :  { %15 = vsyncpa [#allocation4], 0  ;;  %s786_s24 = smov [#allocation5]   ;;  %s668_s28 = scalar_lea.hbm %s939_s1, 4096 }
   0x4   :  { %s31_s25 = sshll.u32 %s786_s24, 4  ;;  %p669_p0 = scmp.ne.s32.totalorder %s939_s1, %s668_s28  ;;  %s32_s25 = int_to_ptr.vmem [resolvable:$true] %s31_s25 }
   0x5   :  { %p672_p1 = scmp.lt.u32.totalorder %s668_s28, %s939_s1 }
   0x7   :  { %p674_p2 = pnand %p672_p1, %p669_p0 }
   0x9   :  { %677 = shalt.err (!%p674_p2)
}
   0xa   :  { %s678_s10 = scalar_lea.vmem %s32_s25, 4096  ;;  %p683_p4 = scmp.lt.s32.totalorder %s32_s25, %s32_s25 }
   0xb   :  { %p679_p3 = scmp.ne.s32.totalorder %s32_s25, %s678_s10  ;;  %p684_p5 = scmp.lt.s32.totalorder %s678_s10, %s678_s10 }
   0xd   :  { %p685_p6 = por %p684_p5, %p683_p4 }
   0xf   :  { %p686_p7 = pnand %p685_p6, %p679_p3 }
  0x11   :  { %689 = shalt.err (!%p686_p7)
}
  0x12   :  { %s787_s11 = smov 128   ;;  %s788_s12 = smov 8  }
  0x13   :  { %37 = dma.hbm_to_vmem [thread:$0]  %s939_s1, 4096, %s32_s25, [#allocation6], %s787_s11, %s787_s11, %s788_s12  }
  0x14   :  { %s789_s15 = smov [#allocation2]   ;;  %s790_s17 = smov [#allocation7]  }
  0x15   :  { %s22_s16 = sshll.u32 %s789_s15, 4  ;;  %s45_s18 = sshll.u32 %s790_s17, 4  ;;  %s23_s16 = int_to_ptr.vmem [resolvable:$true] %s22_s16  ;;  %s46_s18 = int_to_ptr.vmem [resolvable:$true] %s45_s18 }
  0x16   :  { %s690_s21 = scalar_lea.hbm %s938_s0, 64 }
  0x17   :  { %p691_p8 = scmp.ne.s32.totalorder %s938_s0, %s690_s21  ;;  %p694_p9 = scmp.lt.u32.totalorder %s690_s21, %s938_s0 }
  0x19   :  { %p696_p10 = pnand %p694_p9, %p691_p8 }
  0x1b   :  { %699 = shalt.err (!%p696_p10)
}
  0x1c   :  { %s700_s1 = scalar_lea.vmem %s23_s16, 64  ;;  %p705_p12 = scmp.lt.s32.totalorder %s23_s16, %s23_s16 }
  0x1d   :  { %p701_p11 = scmp.ne.s32.totalorder %s23_s16, %s700_s1  ;;  %p706_p13 = scmp.lt.s32.totalorder %s700_s1, %s700_s1 }
  0x1f   :  { %p707_p0 = por %p706_p13, %p705_p12 }
  0x21   :  { %p708_p1 = pnand %p707_p0, %p701_p11 }
  0x23   :  { %711 = shalt.err (!%p708_p1)
}
  0x24   :  { %25 = dma.hbm_to_vmem [thread:$0]  %s938_s0, 64, %s23_s16, [#allocation3]  }
  0x25   :  { %s712_s30 = scalar_lea.hbm %s941_s3, 2048 }
  0x26   :  { %p713_p2 = scmp.ne.s32.totalorder %s941_s3, %s712_s30  ;;  %p716_p3 = scmp.lt.u32.totalorder %s712_s30, %s941_s3 }
  0x28   :  { %p718_p4 = pnand %p716_p3, %p713_p2 }
  0x2a   :  { %721 = shalt.err (!%p718_p4)
}
  0x2b   :  { %s722_s14 = scalar_lea.vmem %s46_s18, 2048  ;;  %p727_p6 = scmp.lt.s32.totalorder %s46_s18, %s46_s18 }
  0x2c   :  { %p723_p5 = scmp.ne.s32.totalorder %s46_s18, %s722_s14  ;;  %p728_p7 = scmp.lt.s32.totalorder %s722_s14, %s722_s14 }
  0x2e   :  { %p729_p8 = por %p728_p7, %p727_p6 }
  0x30   :  { %p730_p9 = pnand %p729_p8, %p723_p5 }
  0x32   :  { %733 = shalt.err (!%p730_p9)
}
  0x33   :  { %51 = dma.hbm_to_vmem [thread:$0]  %s941_s3, 2048, %s46_s18, [#allocation6], %s787_s11, %s787_s11, %s788_s12  }
  0x34   :  { %s791_s16 = smov [#allocation8]   ;;  %s734_s21 = scalar_lea.hbm %s943_s5, 2048 }
  0x35   :  { %s59_s17 = sshll.u32 %s791_s16, 4  ;;  %p735_p10 = scmp.ne.s32.totalorder %s943_s5, %s734_s21  ;;  %s60_s17 = int_to_ptr.vmem [resolvable:$true] %s59_s17 }
  0x36   :  { %p738_p11 = scmp.lt.u32.totalorder %s734_s21, %s943_s5 }
  0x38   :  { %p740_p12 = pnand %p738_p11, %p735_p10 }
  0x3a   :  { %743 = shalt.err (!%p740_p12)
}
  0x3b   :  { %s744_s1 = scalar_lea.vmem %s60_s17, 2048  ;;  %p749_p0 = scmp.lt.s32.totalorder %s60_s17, %s60_s17 }
  0x3c   :  { %p745_p13 = scmp.ne.s32.totalorder %s60_s17, %s744_s1  ;;  %p750_p1 = scmp.lt.s32.totalorder %s744_s1, %s744_s1 }
  0x3e   :  { %p751_p2 = por %p750_p1, %p749_p0 }
  0x40   :  { %p752_p3 = pnand %p751_p2, %p745_p13 }
  0x42   :  { %755 = shalt.err (!%p752_p3)
}
  0x43   :  { %65 = dma.hbm_to_vmem [thread:$0]  %s943_s5, 2048, %s60_s17, [#allocation9], %s787_s11, %s787_s11, %s788_s12  }
  0x44   :  { %778 = dma.done.wait [#allocation3], 64  }
  0x45   :  { %779 = vsyncadd [#allocation3], 4294967232 }
  0x46   :  { %780 = dma.done.wait [#allocation6], 6144  }
  0x47   :  { %781 = vsyncadd [#allocation6], 4294961152 }
  0x48   :  { %782 = dma.done.wait [#allocation9], 2048  }
  0x49   :  { %783 = vsyncadd [#allocation9], 4294965248  ;;  %v792_v0 = vmov 0.0|0.0   ;;  %v97_v1 = vld [vmem:[#allocation5 + $0x80] sm:$0xff]  ;;  %v98_v2 = vld [vmem:[#allocation5 + $0x88] sm:$0xff]  ;;  %vm793_vm0 = vmmov 0  }
  0x4a   :  { %604 = vmatprep.subr.bf16.mxu1 %v792_v0  ;;  %v81_v3 = vld [vmem:[#allocation5] sm:$0xff]  ;;  %v572_v4 = vpack.c.bf16 %v98_v2, %v97_v1  ;;  %v82_v5 = vld [vmem:[#allocation5 + $0x8] sm:$0xff]  ;;  %v99_v6 = vld [vmem:[#allocation5 + $0x90] sm:$0xff]  ;;  %vm383_vm1 = vcmask 1041408  }
  0x4b   :  { %v100_v7 = vld [vmem:[#allocation5 + $0x98] sm:$0xff]  ;;  %v574_v8 = vpack.c.bf16 %v82_v5, %v81_v3  ;;  %v83_v10 = vld [vmem:[#allocation5 + $0x10] sm:$0xff]  ;;  %v101_v12 = vld [vmem:[#allocation5 + $0xa0] sm:$0xff] }
  0x4c   :  { %v576_v9 = vpack.c.bf16 %v100_v7, %v99_v6  ;;  %v84_v11 = vld [vmem:[#allocation5 + $0x18] sm:$0xff]  ;;  %573 = vmatprep.subr.bf16.mxu0 %v572_v4  ;;  %v102_v13 = vld [vmem:[#allocation5 + $0xa8] sm:$0xff]  ;;  %v85_v16 = vld [vmem:[#allocation5 + $0x20] sm:$0xff] }
  0x4d   :  { %575 = vmatpush3.bf16.msra.mxu0 %v574_v8  ;;  %v578_v14 = vpack.c.bf16 %v84_v11, %v83_v10  ;;  %v580_v15 = vpack.c.bf16 %v102_v13, %v101_v12  ;;  %v86_v17 = vld [vmem:[#allocation5 + $0x28] sm:$0xff]  ;;  %v103_v18 = vld [vmem:[#allocation5 + $0xb0] sm:$0xff]  ;;  %v104_v19 = vld [vmem:[#allocation5 + $0xb8] sm:$0xff]  ;;  %v794_v12 = vmov 0.0  }
  0x4e   :  { %577 = vmatprep.subr.bf16.mxu0 %v576_v9  ;;  %v582_v20 = vpack.c.bf16 %v86_v17, %v85_v16  ;;  %v584_v21 = vpack.c.bf16 %v104_v19, %v103_v18  ;;  %v87_v22 = vld [vmem:[#allocation5 + $0x30] sm:$0xff]  ;;  %v88_v23 = vld [vmem:[#allocation5 + $0x38] sm:$0xff]  ;;  %v105_v24 = vld [vmem:[#allocation5 + $0xc0] sm:$0xff]  ;;  %534 = vmatprep.mubr.msk.f32.mxu1 %vm793_vm0, %v794_v12 }
  0x4f   :  { %v106_v25 = vld [vmem:[#allocation5 + $0xc8] sm:$0xff]  ;;  %v894_v26 = vld.sshfl [vmem:[#allocation2] sm:$0x33 pattern:$0x76325410]  ;;  %v202_v28 = vld [vmem:[#allocation7] sm:$0xff]  ;;  %v586_v31 = vpack.c.bf16 %v88_v23, %v87_v22 }
  0x50   :  { %v128_v27 = vcombine.high %v894_v26, %v894_v26  ;;  %v203_v29 = vld [vmem:[#allocation7 + $0x8] sm:$0xff]  ;;  %v204_v30 = vld [vmem:[#allocation7 + $0x10] sm:$0xff]  ;;  %v205_v33 = vld [vmem:[#allocation7 + $0x18] sm:$0xff]  ;;  %v588_v34 = vpack.c.bf16 %v106_v25, %v105_v24 }
  0x51   :  { %579 = vmatpush3.bf16.msra.mxu0 %v578_v14  ;;  %v605_v32 = vpack.c.bf16 %v203_v29, %v202_v28  ;;  %v89_v35 = vld [vmem:[#allocation5 + $0x40] sm:$0xff]  ;;  %v90_v36 = vld [vmem:[#allocation5 + $0x48] sm:$0xff]  ;;  %v107_v37 = vld [vmem:[#allocation5 + $0xd0] sm:$0xff]  ;;  %v608_v39 = vpack.c.bf16 %v205_v33, %v204_v30 }
  0x52   :  { %581 = vmatprep.subr.bf16.mxu0 %v580_v15  ;;  %195 = vmatprep.mubr.f32.mxu0 %v128_v27  ;;  %v108_v38 = vld [vmem:[#allocation5 + $0xd8] sm:$0xff]  ;;  %v206_v40 = vld [vmem:[#allocation7 + $0x20] sm:$0xff]  ;;  %v207_v41 = vld [vmem:[#allocation7 + $0x28] sm:$0xff]  ;;  %v590_v42 = vpack.c.bf16 %v90_v36, %v89_v35 }
  0x53   :  { %606 = vmatpush3.bf16.msra.mxu1 %v605_v32  ;;  %v592_v43 = vpack.c.bf16 %v108_v38, %v107_v37  ;;  %v91_v44 = vld [vmem:[#allocation5 + $0x50] sm:$0xff]  ;;  %v92_v45 = vld [vmem:[#allocation5 + $0x58] sm:$0xff]  ;;  %v109_v46 = vld [vmem:[#allocation5 + $0xe0] sm:$0xff]  ;;  %v611_v48 = vpack.c.bf16 %v207_v41, %v206_v40 }
  0x54   :  { %607 = vmatprep.subr.bf16.mxu1 %v792_v0  ;;  %v110_v47 = vld [vmem:[#allocation5 + $0xe8] sm:$0xff]  ;;  %v208_v49 = vld [vmem:[#allocation7 + $0x30] sm:$0xff]  ;;  %v209_v50 = vld [vmem:[#allocation7 + $0x38] sm:$0xff]  ;;  %v594_v51 = vpack.c.bf16 %v92_v45, %v91_v44 }
  0x55   :  { %583 = vmatpush3.bf16.msra.mxu0 %v582_v20  ;;  %v596_v52 = vpack.c.bf16 %v110_v47, %v109_v46  ;;  %v93_v53 = vld [vmem:[#allocation5 + $0x60] sm:$0xff]  ;;  %v94_v54 = vld [vmem:[#allocation5 + $0x68] sm:$0xff]  ;;  %v111_v55 = vld [vmem:[#allocation5 + $0xf0] sm:$0xff]  ;;  %v614_v57 = vpack.c.bf16 %v209_v50, %v208_v49 }
  0x56   :  { %585 = vmatprep.subr.bf16.mxu0 %v584_v21  ;;  %v112_v56 = vld [vmem:[#allocation5 + $0xf8] sm:$0xff]  ;;  %v210_v58 = vld [vmem:[#allocation7 + $0x40] sm:$0xff]  ;;  %v211_v59 = vld [vmem:[#allocation7 + $0x48] sm:$0xff]  ;;  %v598_v60 = vpack.c.bf16 %v94_v54, %v93_v53 }
  0x57   :  { %609 = vmatpush3.bf16.msra.mxu1 %v608_v39  ;;  %v600_v61 = vpack.c.bf16 %v112_v56, %v111_v55  ;;  %v95_v62 = vld [vmem:[#allocation5 + $0x70] sm:$0xff]  ;;  %v96_v63 = vld [vmem:[#allocation5 + $0x78] sm:$0xff]  ;;  %v617_v1 = vpack.c.bf16 %v211_v59, %v210_v58  ;;  %v214_v6 = vld [vmem:[#allocation7 + $0x60] sm:$0xff] }
  0x58   :  { %610 = vmatprep.subr.bf16.mxu1 %v792_v0  ;;  %v212_v2 = vld [vmem:[#allocation7 + $0x50] sm:$0xff]  ;;  %v213_v3 = vld [vmem:[#allocation7 + $0x58] sm:$0xff]  ;;  %v602_v4 = vpack.c.bf16 %v96_v63, %v95_v62  ;;  %v215_v7 = vld [vmem:[#allocation7 + $0x68] sm:$0xff] }
  0x59   :  { %587 = vmatpush3.bf16.msra.mxu0 %v586_v31  ;;  %v620_v5 = vpack.c.bf16 %v213_v3, %v212_v2  ;;  %v623_v8 = vpack.c.bf16 %v215_v7, %v214_v6  ;;  %v216_v9 = vld [vmem:[#allocation7 + $0x70] sm:$0xff]  ;;  %v217_v10 = vld [vmem:[#allocation7 + $0x78] sm:$0xff]  ;;  %v295_v13 = vld [vmem:[#allocation8] sm:$0xff] }
  0x5a   :  { %589 = vmatprep.subr.bf16.mxu0 %v588_v34  ;;  %v626_v11 = vpack.c.bf16 %v217_v10, %v216_v9  ;;  %v296_v14 = vld [vmem:[#allocation8 + $0x8] sm:$0xff]  ;;  %v297_v15 = vld [vmem:[#allocation8 + $0x10] sm:$0xff]  ;;  %v298_v17 = vld [vmem:[#allocation8 + $0x18] sm:$0xff] }
  0x5b   :  { %612 = vmatpush3.bf16.msra.mxu1 %v611_v48  ;;  %v629_v16 = vpack.c.bf16 %v296_v14, %v295_v13  ;;  %v632_v18 = vpack.c.bf16 %v298_v17, %v297_v15  ;;  %v299_v19 = vld [vmem:[#allocation8 + $0x20] sm:$0xff]  ;;  %v300_v20 = vld [vmem:[#allocation8 + $0x28] sm:$0xff]  ;;  %v301_v22 = vld [vmem:[#allocation8 + $0x30] sm:$0xff] }
  0x5c   :  { %613 = vmatprep.subr.bf16.mxu1 %v792_v0  ;;  %v635_v21 = vpack.c.bf16 %v300_v20, %v299_v19  ;;  %v302_v23 = vld [vmem:[#allocation8 + $0x38] sm:$0xff]  ;;  %v303_v25 = vld [vmem:[#allocation8 + $0x40] sm:$0xff]  ;;  %v305_v28 = vld [vmem:[#allocation8 + $0x50] sm:$0xff] }
  0x5d   :  { %591 = vmatpush3.bf16.msra.mxu0 %v590_v42  ;;  %v638_v24 = vpack.c.bf16 %v302_v23, %v301_v22  ;;  %v306_v29 = vld [vmem:[#allocation8 + $0x58] sm:$0xff]  ;;  %v307_v31 = vld [vmem:[#allocation8 + $0x60] sm:$0xff]  ;;  %v308_v32 = vld [vmem:[#allocation8 + $0x68] sm:$0xff] }
  0x5e   :  { %593 = vmatprep.subr.bf16.mxu0 %v592_v43  ;;  %v644_v30 = vpack.c.bf16 %v306_v29, %v305_v28  ;;  %v647_v33 = vpack.c.bf16 %v308_v32, %v307_v31  ;;  %v429_v35 = vld [vmem:[%s940_s2] ss:$0 sm:$0xff]  ;;  %v309_v40 = vld [vmem:[#allocation8 + $0x70] sm:$0xff] }
  0x5f   :  { %615 = vmatpush3.bf16.msra.mxu1 %v614_v57  ;;  %v310_v41 = vld [vmem:[#allocation8 + $0x78] sm:$0xff] }
  0x60   :  { %616 = vmatprep.subr.bf16.mxu1 %v792_v0  ;;  %v650_v42 = vpack.c.bf16 %v310_v41, %v309_v40  ;;  %v431_v43 = vld [vmem:[%s942_s4] ss:$0 sm:$0xff]  ;;  %s795_s4 = smov [#allocation10]  }
  0x61   :  { %595 = vmatpush3.bf16.msra.mxu0 %v594_v51 }
  0x62   :  { %597 = vmatprep.subr.bf16.mxu0 %v596_v52  ;;  %v432_v52 = vld [vmem:[%s944_s6] ss:$0 sm:$0xff]  ;;  %s418_s6 = sshll.u32 %s795_s4, 4  ;;  %s419_s6 = int_to_ptr.vmem [resolvable:$true] %s418_s6 }
  0x63   :  { %618 = vmatpush3.bf16.msra.mxu1 %v617_v1  ;;  %s756_s28 = scalar_lea.vmem %s419_s6, 32  ;;  %p761_p5 = scmp.lt.s32.totalorder %s419_s6, %s419_s6 }
  0x64   :  { %619 = vmatprep.subr.bf16.mxu1 %v792_v0  ;;  %p757_p4 = scmp.ne.s32.totalorder %s419_s6, %s756_s28  ;;  %p762_p6 = scmp.lt.s32.totalorder %s756_s28, %s756_s28 }
  0x65   :  { %599 = vmatpush3.bf16.msra.mxu0 %v598_v60 }
  0x66   :  { %601 = vmatprep.subr.bf16.mxu0 %v600_v61  ;;  %p763_p7 = por %p762_p6, %p761_p5 }
  0x67   :  { %621 = vmatpush3.bf16.msra.mxu1 %v620_v5 }
  0x68   :  { %622 = vmatprep.subr.bf16.mxu1 %v792_v0  ;;  %p764_p8 = pnand %p763_p7, %p757_p4 }
  0x69   :  { %603 = vmatpush3.bf16.msra.mxu0 %v602_v4 }
  0x6a   :  { %628 = vmatprep.subr.bf16.mxu0 %v792_v0 }
  0x6b   :  { %624 = vmatpush3.bf16.msra.mxu1 %v623_v8 }
  0x6c   :  { %196 = vmatmul.mubr.f32.vlgmr.msra.gmra.mrb[0].mxu0 %v894_v26  ;;  %625 = vmatprep.subr.bf16.mxu1 %v792_v0  ;;  %v304_v26 = vld [vmem:[#allocation8 + $0x48] sm:$0xff] }
  0x6d   :  { %569 = vmatprep.mubr.msk.f32.mxu0 %vm793_vm0, %v794_v12  ;;  %630 = vmatpush3.bf16.msra.mxu0 %v629_v16  ;;  %v641_v27 = vpack.c.bf16 %v304_v26, %v303_v25 }
  0x6e   :  { %631 = vmatprep.subr.bf16.mxu0 %v792_v0 }
  0x6f   :  { %627 = vmatpush3.bf16.msra.mxu1 %v626_v11 }
  0x71   :  { %633 = vmatpush3.bf16.msra.mxu0 %v632_v18 }
  0x72   :  { %634 = vmatprep.subr.bf16.mxu0 %v792_v0 }
  0x75   :  { %636 = vmatpush3.bf16.msra.mxu0 %v635_v21 }
  0x76   :  { %637 = vmatprep.subr.bf16.mxu0 %v792_v0 }
  0x79   :  { %639 = vmatpush3.bf16.msra.mxu0 %v638_v24 }
  0x7a   :  { %640 = vmatprep.subr.bf16.mxu0 %v792_v0 }
  0x7d   :  { %642 = vmatpush3.bf16.msra.mxu0 %v641_v27 }
  0x7e   :  { %643 = vmatprep.subr.bf16.mxu0 %v792_v0 }
  0x81   :  { %645 = vmatpush3.bf16.msra.mxu0 %v644_v30 }
  0x82   :  { %646 = vmatprep.subr.bf16.mxu0 %v792_v0 }
  0x85   :  { %648 = vmatpush3.bf16.msra.mxu0 %v647_v33 }
  0x86   :  { %649 = vmatprep.subr.bf16.mxu0 %v792_v0 }
  0x89   :  { %651 = vmatpush3.bf16.msra.mxu0 %v650_v42 }
 0x13f   :  { %v465_v34 = vpop.f32.mrb[0].mxu0 }
 0x140   :  { %v466_v36 = vpop.f32.mrb[1].mxu0 }
 0x141   :  { %v467_v37 = vadd.f32 %v466_v36, %v465_v34 }
 0x143   :  { %v198_v38 = vadd.f32 %v467_v37, %v429_v35 }
 0x145   :  { %v201_v39 = vmax.f32 %v198_v38, 0.0 }
 0x147   :  { %535 = vmatmul.mubr.f32.vlgmr.msra.gmra.mrb[0].mxu1 %v201_v39 }
 0x21a   :  { %v291_v44 = vpop.f32.mrb[0].mxu1 }
 0x21b   :  { %v292_v0 = vadd.f32 %v431_v43, %v291_v44  ;;  %v536_v45 = vpop.f32.mrb[1].mxu1 }
 0x21d   :  { %570 = vmatmul.mubr.f32.vlgmr.msra.gmra.mrb[2].mxu0 %v292_v0  ;;  %v382_v46 = vmul.f32 %v292_v0, %v292_v0 }
 0x21f   :  { %v384_v47 = vsel %vm383_vm1, %v382_v46, 0.0 }
 0x220   :  { %385 = vadd.xlane.f32.xlu0 %v384_v47 }
 0x2ad   :  { %v386_v48 = vpop.xlane.xlu0 %385 }
 0x2ae   :  { %v387_v49 = vadd.f32 1e-12, %v386_v48 }
 0x2b0   :  { %662 = vrsqrt.f32 %v387_v49 }
 0x2ba   :  { %v663_v50 = vpop.eup %662 }
 0x2f0   :  { %v377_v51 = vpop.f32.mrb[2].mxu0 }
 0x2f1   :  { %v389_v53 = vmul.f32 %v663_v50, %v377_v51  ;;  %v571_v54 = vpop.f32.mrb[3].mxu0 }
 0x2f3   :  { %v396_v55 = vadd.f32 %v432_v52, %v389_v53 }
 0x2f5   :  { %v397_v56 = vsel %vm383_vm1, %v396_v55, -inf }
 0x2f6   :  { %398 = vmax.xlane.f32.xlu0 %v397_v56 }
 0x383   :  { %v399_v57 = vpop.xlane.xlu0 %398 }
 0x384   :  { %v400_v58 = vsub.f32 %v396_v55, %v399_v57 }
 0x386   :  { %v401_v59 = vmul.f32 1.442695, %v400_v58 }
 0x388   :  { %664 = vpow2.f32 %v401_v59 }
 0x392   :  { %v665_v60 = vpop.eup %664 }
 0x393   :  { %v403_v61 = vsel %vm383_vm1, %v665_v60, 0.0 }
 0x394   :  { %404 = vadd.xlane.f32.xlu1 %v403_v61 }
 0x421   :  { %v405_v62 = vpop.xlane.xlu1 %404 }
 0x422   :  { %666 = vrcp.f32 %v405_v62 }
 0x42c   :  { %v667_v63 = vpop.eup %666 }
 0x42d   :  { %v407_v1 = vmul.f32 %v667_v63, %v405_v62 }
 0x42f   :  { %v408_v2 = vsub.f32 2.0, %v407_v1 }
 0x431   :  { %v409_v3 = vmul.f32 %v667_v63, %v408_v2 }
 0x433   :  { %v410_v4 = vmul.f32 %v665_v60, %v409_v3 }
 0x435   :  { %411 = vst [vmem:[#allocation10] sm:$0x3] %v410_v4 }
 0x436   :  { %767 = shalt.err (!%p764_p8)
}
 0x437   :  { %s768_s8 = scalar_lea.hbm %s945_s7, 32 }
 0x438   :  { %p769_p9 = scmp.ne.s32.totalorder %s945_s7, %s768_s8  ;;  %p772_p10 = scmp.lt.u32.totalorder %s768_s8, %s945_s7 }
 0x43a   :  { %p774_p11 = pnand %p772_p10, %p769_p9 }
 0x43c   :  { %777 = shalt.err (!%p774_p11)
}
 0x43d   :  { %421 = dma.vmem_to_hbm [thread:$0]  %s419_s6, 32, %s945_s7, [#allocation4]  }
 0x43e   :  { %784 = dma.done.wait [#allocation4], 32  }
 0x43f   :  { %785 = vsyncadd [#allocation4], 4294967264 }
 0x440   :  { %425 = vsyncpa [#allocation3], 1 }
 0x441   :  { %426 = vsyncpa [#allocation6], 1 }
 0x442   :  { %427 = vsyncpa [#allocation9], 1 }
 0x443   :  { %428 = vsyncpa [#allocation4], 1 }

</bundles_post_ra>
